<compile_context>
chip_gen: v7x
topology: tpu7x:2x2x1
jax: 0.10.0
libtpu: 0.0.40
codegen_flags: <defaults>
</compile_context>

<pallas_src>
import jax
import jax.numpy as jnp
from jax.experimental import pallas as pl
from jax.experimental.pallas import tpu as pltpu

HIDDEN_SIZE = 60
INPUT_SIZE = 784
CLASSES_NUM = 10
NEG_SLOPE = 0.01          # F.leaky_relu default negative_slope
OUT_LANES = 128           # lane-dense padded output width (unmasked stores)
TILE_B_MAX = 1024         # batch rows per grid step (multiple of 16)


def _round_up(n, m):
    return ((n + m - 1) // m) * m


def _leaky_relu(x):
    return jnp.where(x > 0, x, NEG_SLOPE * x)


def _mlp_kernel(x_ref, w1_ref, b1_ref, w2_ref, b2_ref,
                w3_ref, b3_ref, w4_ref, b4_ref, o_ref):
    # x tile arrives as f32 straight from the caller (no wrapper-side cast /
    # extra HBM pass over x); cast to bf16 in VMEM for the MXU.
    x = x_ref[...].astype(jnp.bfloat16)

    h1 = jnp.dot(x, w1_ref[...], preferred_element_type=jnp.float32) + b1_ref[...]
    h1 = _leaky_relu(h1)

    h2 = jnp.dot(h1.astype(jnp.bfloat16), w2_ref[...],
                 preferred_element_type=jnp.float32) + b2_ref[...]
    h2 = _leaky_relu(h2)

    h3 = jnp.dot(h2.astype(jnp.bfloat16), w3_ref[...],
                 preferred_element_type=jnp.float32) + b3_ref[...]
    h3 = _leaky_relu(h3)

    # Final layer is pre-padded to OUT_LANES columns -> (TB, 128) lane-dense
    # store; bf16 halves the output HBM write vs f32.
    h4 = jnp.dot(h3.astype(jnp.bfloat16), w4_ref[...],
                 preferred_element_type=jnp.float32) + b4_ref[...]
    o_ref[...] = h4.astype(o_ref.dtype)


def _pick_batch_tiling(b, max_tb):
    """Minimal batch padding + a tile size that divides it exactly.

    Returns (b_pad, tb) with:
      * b_pad = b rounded up to a multiple of 16 (bf16 sublane packing),
      * tb a multiple of 16, tb <= max_tb, tb | b_pad,
      * >= 2 grid steps whenever b_pad >= 32 (so both v7x TCs get work).
    """
    max_tb = max(16, (max_tb // 16) * 16)

    def best_divisor_tile(b_pad, min_tiles):
        units = b_pad // 16
        best = 0
        for d in range(1, units + 1):
            if units % d:
                continue
            tb = 16 * d
            if tb > max_tb:
                break
            if (b_pad // tb) >= min_tiles:
                best = tb
        return best

    b_pad = _round_up(b, 16)
    min_tiles = 2 if b_pad >= 32 else 1
    tb = best_divisor_tile(b_pad, min_tiles)

    # Awkward batch sizes: minimal padding may only admit tiny tiles (many
    # grid steps). Pad a little further (multiple of 128) to unlock big tiles.
    if tb and tb < max_tb and (b_pad // tb) > 8:
        b_pad2 = _round_up(b, 128)
        tb2 = best_divisor_tile(b_pad2, min_tiles)
        if tb2 > tb:
            b_pad, tb = b_pad2, tb2

    if not tb:                      # defensive; cannot happen for max_tb >= 16
        tb = 16
        b_pad = _round_up(b, 16)
    return b_pad, tb


def mlp_forward(x_img, params, *, tile_b=TILE_B_MAX):
    """x_img: (B, 1, 28, 28) float32 NCHW. Returns (B, classes_num) float32."""
    b = x_img.shape[0]
    x = x_img.reshape(b, INPUT_SIZE)          # same semantics as torch .view(-1, 784)

    (w1, b1), (w2, b2), (w3, b3), (w4, b4) = params
    classes = w4.shape[1]

    # --- batch tiling: minimal padding, tb divides b_pad, >=2 tiles if possible
    b_pad, tb = _pick_batch_tiling(b, tile_b)
    if b_pad != b:
        x = jnp.pad(x, ((0, b_pad - b), (0, 0)))
    num_tiles = b_pad // tb

    # --- weight prep: bf16 weights; f32 biases; pad last layer to 128 lanes ---
    w4p = jnp.pad(w4, ((0, 0), (0, OUT_LANES - classes)))
    b4p = jnp.pad(b4, ((0, 0), (0, OUT_LANES - classes)))
    w1b = w1.astype(jnp.bfloat16)
    w2b = w2.astype(jnp.bfloat16)
    w3b = w3.astype(jnp.bfloat16)
    w4b = w4p.astype(jnp.bfloat16)

    # --- specs -----------------------------------------------------------------
    x_spec = pl.BlockSpec((tb, INPUT_SIZE), lambda i: (i, 0))
    out_spec = pl.BlockSpec((tb, OUT_LANES), lambda i: (i, 0))

    # Weights / biases: full-array blocks, same block index every step -> stay
    # VMEM-resident across the whole grid (no per-step re-DMA).
    def resident(arr):
        return pl.BlockSpec(arr.shape, lambda i: (0, 0))

    flops = 2 * b_pad * (INPUT_SIZE * HIDDEN_SIZE + HIDDEN_SIZE * 32
                         + 32 * 16 + 16 * OUT_LANES)
    weight_bytes = sum(int(a.size) * a.dtype.itemsize
                       for a in (w1b, w2b, w3b, w4b, b1, b2, b3, b4p))
    bytes_accessed = (b_pad * INPUT_SIZE * 4          # f32 x read
                      + weight_bytes
                      + b_pad * OUT_LANES * 2)        # bf16 output write

    out_padded = pl.pallas_call(
        _mlp_kernel,
        out_shape=jax.ShapeDtypeStruct((b_pad, OUT_LANES), jnp.bfloat16),
        grid=(num_tiles,),
        in_specs=[x_spec,
                  resident(w1b), resident(b1),
                  resident(w2b), resident(b2),
                  resident(w3b), resident(b3),
                  resident(w4b), resident(b4p)],
        out_specs=out_spec,
        compiler_params=pltpu.CompilerParams(
            dimension_semantics=("parallel",),
            vmem_limit_bytes=32 * 1024 * 1024),
        cost_estimate=pl.CostEstimate(flops=flops,
                                      bytes_accessed=bytes_accessed,
                                      transcendentals=0),
    )(x, w1b, b1, w2b, b2, w3b, b3, w4b, b4p)

    # Strip batch padding and lane padding; return f32 logits.
    return out_padded[:b, :classes].astype(jnp.float32)


def init_params(key, classes_num=CLASSES_NUM):
    """Deterministic init. Weights stored as (in, out); biases as (1, out); f32."""
    dims = [(INPUT_SIZE, HIDDEN_SIZE), (HIDDEN_SIZE, 32), (32, 16), (16, classes_num)]
    params = []
    for i, (fan_in, fan_out) in enumerate(dims):
        kw, kb, key = jax.random.split(jax.random.fold_in(key, i), 3)
        bound = 1.0 / jnp.sqrt(fan_in)   # PyTorch nn.Linear default init range
        w = jax.random.uniform(kw, (fan_in, fan_out), jnp.float32, -bound, bound)
        b_ = jax.random.uniform(kb, (1, fan_out), jnp.float32, -bound, bound)
        params.append((w, b_))
    return params


def _reference_forward(x_img, params, *, match_kernel):
    """Pure-JAX reference. match_kernel=True mirrors the kernel's bf16 casts."""
    x = x_img.reshape(x_img.shape[0], INPUT_SIZE).astype(jnp.float32)
    h = x
    for idx, (w, b_) in enumerate(params):
        if match_kernel:
            hm, wm = h.astype(jnp.bfloat16), w.astype(jnp.bfloat16)
        else:
            hm, wm = h, w
        h = jnp.dot(hm, wm, preferred_element_type=jnp.float32) + b_
        if idx < len(params) - 1:
            h = _leaky_relu(h)
    if match_kernel:
        h = h.astype(jnp.bfloat16).astype(jnp.float32)   # same final bf16 store
    return h


if __name__ == "__main__":
    key = jax.random.PRNGKey(0)
    k_x, k_p = jax.random.split(key)

    batch = 2
    x_img = jax.random.normal(k_x, (batch, 1, 28, 28), dtype=jnp.float32)
    params = init_params(k_p, CLASSES_NUM)

    out = mlp_forward(x_img, params)
    out = jax.block_until_ready(out)
    assert out.shape == (batch, CLASSES_NUM)

    # Exact-semantics reference (same bf16 matmul inputs / f32 accumulation /
    # final bf16 store).
    ref_match = _reference_forward(x_img, params, match_kernel=True)
    assert jnp.allclose(out, ref_match, atol=1e-2, rtol=1e-2), "mismatch vs bf16 reference"

    # Sanity check vs full-f32 math (loose tolerance covers the bf16 casts).
    ref_f32 = _reference_forward(x_img, params, match_kernel=False)
    assert jnp.allclose(out, ref_f32, atol=5e-2, rtol=5e-2), "mismatch vs f32 reference"

    print("KERNEL_OK")
</pallas_src>

<mosaic_0001>
module attributes {stable_mosaic.version = 11 : i64} {
  func.func @_mlp_kernel(%arg0: i32, %arg1: memref<16x784xf32, #tpu.memory_space<vmem>>, %arg2: memref<784x60xbf16, #tpu.memory_space<vmem>>, %arg3: memref<1x60xf32, #tpu.memory_space<vmem>>, %arg4: memref<60x32xbf16, #tpu.memory_space<vmem>>, %arg5: memref<1x32xf32, #tpu.memory_space<vmem>>, %arg6: memref<32x16xbf16, #tpu.memory_space<vmem>>, %arg7: memref<1x16xf32, #tpu.memory_space<vmem>>, %arg8: memref<16x128xbf16, #tpu.memory_space<vmem>>, %arg9: memref<1x128xf32, #tpu.memory_space<vmem>>, %arg10: memref<16x128xbf16, #tpu.memory_space<vmem>>) attributes {dimension_semantics = [#tpu.dimension_semantics<parallel>], iteration_bounds = array<i64: 1>, scalar_prefetch = 0 : i64, scratch_operands = 0 : i64, tpu.core_type = #tpu.core_type<tc>, window_params = [{transform_indices = @transform_0, window_bounds = array<i64: 16, 784>}, {pipeline_mode = #tpu.pipeline_mode<synchronous>, transform_indices = @transform_1, window_bounds = array<i64: 784, 60>}, {pipeline_mode = #tpu.pipeline_mode<synchronous>, transform_indices = @transform_2, window_bounds = array<i64: 1, 60>}, {pipeline_mode = #tpu.pipeline_mode<synchronous>, transform_indices = @transform_3, window_bounds = array<i64: 60, 32>}, {pipeline_mode = #tpu.pipeline_mode<synchronous>, transform_indices = @transform_4, window_bounds = array<i64: 1, 32>}, {pipeline_mode = #tpu.pipeline_mode<synchronous>, transform_indices = @transform_5, window_bounds = array<i64: 32, 16>}, {pipeline_mode = #tpu.pipeline_mode<synchronous>, transform_indices = @transform_6, window_bounds = array<i64: 1, 16>}, {pipeline_mode = #tpu.pipeline_mode<synchronous>, transform_indices = @transform_7, window_bounds = array<i64: 16, 128>}, {pipeline_mode = #tpu.pipeline_mode<synchronous>, transform_indices = @transform_8, window_bounds = array<i64: 1, 128>}, {transform_indices = @transform_9, window_bounds = array<i64: 16, 128>}]} {
    %c0 = arith.constant 0 : index
    %c0_0 = arith.constant 0 : index
    %0 = vector.load %arg1[%c0, %c0_0] : memref<16x784xf32, #tpu.memory_space<vmem>>, vector<16x784xf32>
    %1 = arith.truncf %0 : vector<16x784xf32> to vector<16x784xbf16>
    %c0_1 = arith.constant 0 : index
    %c0_2 = arith.constant 0 : index
    %2 = vector.load %arg2[%c0_1, %c0_2] : memref<784x60xbf16, #tpu.memory_space<vmem>>, vector<784x60xbf16>
    %cst = arith.constant dense<0.000000e+00> : vector<16x60xf32>
    %3 = tpu.matmul %1, %2, %cst {dimension_numbers = #tpu.dot_dimension_numbers<[1], [0], [0], [1], [0, 0, 1, 1], [], []>} : vector<16x784xbf16>, vector<784x60xbf16>, vector<16x60xf32> -> vector<16x60xf32>
    %c0_3 = arith.constant 0 : index
    %c0_4 = arith.constant 0 : index
    %4 = vector.load %arg3[%c0_3, %c0_4] : memref<1x60xf32, #tpu.memory_space<vmem>>, vector<1x60xf32>
    %5 = vector.broadcast %4 : vector<1x60xf32> to vector<16x60xf32>
    %6 = arith.addf %3, %5 : vector<16x60xf32>
    %cst_5 = arith.constant 0.000000e+00 : f32
    %7 = vector.broadcast %cst_5 : f32 to vector<16x60xf32>
    %8 = arith.cmpf ogt, %6, %7 : vector<16x60xf32>
    %cst_6 = arith.constant 0.00999999977 : f32
    %9 = vector.broadcast %cst_6 : f32 to vector<16x60xf32>
    %10 = arith.mulf %9, %6 : vector<16x60xf32>
    %11 = arith.select %8, %6, %10 : vector<16x60xi1>, vector<16x60xf32>
    %12 = arith.truncf %11 : vector<16x60xf32> to vector<16x60xbf16>
    %c0_7 = arith.constant 0 : index
    %c0_8 = arith.constant 0 : index
    %13 = vector.load %arg4[%c0_7, %c0_8] : memref<60x32xbf16, #tpu.memory_space<vmem>>, vector<60x32xbf16>
    %cst_9 = arith.constant dense<0.000000e+00> : vector<16x32xf32>
    %14 = tpu.matmul %12, %13, %cst_9 {dimension_numbers = #tpu.dot_dimension_numbers<[1], [0], [0], [1], [0, 0, 1, 1], [], []>} : vector<16x60xbf16>, vector<60x32xbf16>, vector<16x32xf32> -> vector<16x32xf32>
    %c0_10 = arith.constant 0 : index
    %c0_11 = arith.constant 0 : index
    %15 = vector.load %arg5[%c0_10, %c0_11] : memref<1x32xf32, #tpu.memory_space<vmem>>, vector<1x32xf32>
    %16 = vector.broadcast %15 : vector<1x32xf32> to vector<16x32xf32>
    %17 = arith.addf %14, %16 : vector<16x32xf32>
    %cst_12 = arith.constant 0.000000e+00 : f32
    %18 = vector.broadcast %cst_12 : f32 to vector<16x32xf32>
    %19 = arith.cmpf ogt, %17, %18 : vector<16x32xf32>
    %cst_13 = arith.constant 0.00999999977 : f32
    %20 = vector.broadcast %cst_13 : f32 to vector<16x32xf32>
    %21 = arith.mulf %20, %17 : vector<16x32xf32>
    %22 = arith.select %19, %17, %21 : vector<16x32xi1>, vector<16x32xf32>
    %23 = arith.truncf %22 : vector<16x32xf32> to vector<16x32xbf16>
    %c0_14 = arith.constant 0 : index
    %c0_15 = arith.constant 0 : index
    %24 = vector.load %arg6[%c0_14, %c0_15] : memref<32x16xbf16, #tpu.memory_space<vmem>>, vector<32x16xbf16>
    %cst_16 = arith.constant dense<0.000000e+00> : vector<16x16xf32>
    %25 = tpu.matmul %23, %24, %cst_16 {dimension_numbers = #tpu.dot_dimension_numbers<[1], [0], [0], [1], [0, 0, 1, 1], [], []>} : vector<16x32xbf16>, vector<32x16xbf16>, vector<16x16xf32> -> vector<16x16xf32>
    %c0_17 = arith.constant 0 : index
    %c0_18 = arith.constant 0 : index
    %26 = vector.load %arg7[%c0_17, %c0_18] : memref<1x16xf32, #tpu.memory_space<vmem>>, vector<1x16xf32>
    %27 = vector.broadcast %26 : vector<1x16xf32> to vector<16x16xf32>
    %28 = arith.addf %25, %27 : vector<16x16xf32>
    %cst_19 = arith.constant 0.000000e+00 : f32
    %29 = vector.broadcast %cst_19 : f32 to vector<16x16xf32>
    %30 = arith.cmpf ogt, %28, %29 : vector<16x16xf32>
    %cst_20 = arith.constant 0.00999999977 : f32
    %31 = vector.broadcast %cst_20 : f32 to vector<16x16xf32>
    %32 = arith.mulf %31, %28 : vector<16x16xf32>
    %33 = arith.select %30, %28, %32 : vector<16x16xi1>, vector<16x16xf32>
    %34 = arith.truncf %33 : vector<16x16xf32> to vector<16x16xbf16>
    %c0_21 = arith.constant 0 : index
    %c0_22 = arith.constant 0 : index
    %35 = vector.load %arg8[%c0_21, %c0_22] : memref<16x128xbf16, #tpu.memory_space<vmem>>, vector<16x128xbf16>
    %cst_23 = arith.constant dense<0.000000e+00> : vector<16x128xf32>
    %36 = tpu.matmul %34, %35, %cst_23 {dimension_numbers = #tpu.dot_dimension_numbers<[1], [0], [0], [1], [0, 0, 1, 1], [], []>} : vector<16x16xbf16>, vector<16x128xbf16>, vector<16x128xf32> -> vector<16x128xf32>
    %c0_24 = arith.constant 0 : index
    %c0_25 = arith.constant 0 : index
    %37 = vector.load %arg9[%c0_24, %c0_25] : memref<1x128xf32, #tpu.memory_space<vmem>>, vector<1x128xf32>
    %38 = vector.broadcast %37 : vector<1x128xf32> to vector<16x128xf32>
    %39 = arith.addf %36, %38 : vector<16x128xf32>
    %40 = arith.truncf %39 : vector<16x128xf32> to vector<16x128xbf16>
    %c0_26 = arith.constant 0 : index
    %c0_27 = arith.constant 0 : index
    %41 = vector.load %arg10[%c0_26, %c0_27] : memref<16x128xbf16, #tpu.memory_space<vmem>>, vector<16x128xbf16>
    tpu.vector_store %arg10[%c0_26, %c0_27], %40 {strides = array<i32>} : memref<16x128xbf16, #tpu.memory_space<vmem>>, vector<16x128xbf16>,
    return
  }
  func.func @transform_0(%arg0: i32) -> (i32, i32) {
    %c0_i32 = arith.constant 0 : i32
    %c0_i32_0 = arith.constant 0 : i32
    return %arg0, %c0_i32 : i32, i32
  }
  func.func @transform_1(%arg0: i32) -> (i32, i32) {
    %c0_i32 = arith.constant 0 : i32
    %c0_i32_0 = arith.constant 0 : i32
    %c0_i32_1 = arith.constant 0 : i32
    return %c0_i32, %c0_i32_0 : i32, i32
  }
  func.func @transform_2(%arg0: i32) -> (i32, i32) {
    %c0_i32 = arith.constant 0 : i32
    %c0_i32_0 = arith.constant 0 : i32
    %c0_i32_1 = arith.constant 0 : i32
    return %c0_i32, %c0_i32_0 : i32, i32
  }
  func.func @transform_3(%arg0: i32) -> (i32, i32) {
    %c0_i32 = arith.constant 0 : i32
    %c0_i32_0 = arith.constant 0 : i32
    %c0_i32_1 = arith.constant 0 : i32
    return %c0_i32, %c0_i32_0 : i32, i32
  }
  func.func @transform_4(%arg0: i32) -> (i32, i32) {
    %c0_i32 = arith.constant 0 : i32
    %c0_i32_0 = arith.constant 0 : i32
    %c0_i32_1 = arith.constant 0 : i32
    return %c0_i32, %c0_i32_0 : i32, i32
  }
  func.func @transform_5(%arg0: i32) -> (i32, i32) {
    %c0_i32 = arith.constant 0 : i32
    %c0_i32_0 = arith.constant 0 : i32
    %c0_i32_1 = arith.constant 0 : i32
    return %c0_i32, %c0_i32_0 : i32, i32
  }
  func.func @transform_6(%arg0: i32) -> (i32, i32) {
    %c0_i32 = arith.constant 0 : i32
    %c0_i32_0 = arith.constant 0 : i32
    %c0_i32_1 = arith.constant 0 : i32
    return %c0_i32, %c0_i32_0 : i32, i32
  }
  func.func @transform_7(%arg0: i32) -> (i32, i32) {
    %c0_i32 = arith.constant 0 : i32
    %c0_i32_0 = arith.constant 0 : i32
    %c0_i32_1 = arith.constant 0 : i32
    return %c0_i32, %c0_i32_0 : i32, i32
  }
  func.func @transform_8(%arg0: i32) -> (i32, i32) {
    %c0_i32 = arith.constant 0 : i32
    %c0_i32_0 = arith.constant 0 : i32
    %c0_i32_1 = arith.constant 0 : i32
    return %c0_i32, %c0_i32_0 : i32, i32
  }
  func.func @transform_9(%arg0: i32) -> (i32, i32) {
    %c0_i32 = arith.constant 0 : i32
    %c0_i32_0 = arith.constant 0 : i32
    return %arg0, %c0_i32 : i32, i32
  }
}

</mosaic_0001>

<bundles_post_ra>
// kernel: tpu_custom_call.1
= control target key start
LH: loop header
LB: loop body
LE: loop exit
PB: predicated region body
PF: predicated region fallthrough
CT: control target
= control target key end

     0   :  { %v1151_v43 = vmov 0.0   ;;  %vm1152_vm0 = vmmov 0   ;;  %vm454_vm1 = vcmask 130048   ;;  %s1458_s0 = inlined_call_operand.vmem [shape: f32[16,784], index: 0, kind: input, shape index: {}]   ;;  %s1459_s1 = inlined_call_operand.vmem [shape: bf16[784,60], index: 1, kind: input, shape index: {}]   ;;  %s1460_s2 = inlined_call_operand.vmem [shape: f32[1,60], index: 2, kind: input, shape index: {}]   ;;  %s1461_s3 = inlined_call_operand.vmem [shape: bf16[60,32], index: 3, kind: input, shape index: {}]   ;;  %s1462_s4 = inlined_call_operand.vmem [shape: f32[1,32], index: 4, kind: input, shape index: {}]   ;;  %s1463_s5 = inlined_call_operand.vmem [shape: bf16[32,16], index: 5, kind: input, shape index: {}]   ;;  %s1464_s6 = inlined_call_operand.vmem [shape: f32[1,16], index: 6, kind: input, shape index: {}]   ;;  %s1465_s7 = inlined_call_operand.vmem [shape: bf16[16,128], index: 7, kind: input, shape index: {}]   ;;  %s1466_s8 = inlined_call_operand.vmem [shape: f32[1,128], index: 8, kind: input, shape index: {}]   ;;  %s1467_s9 = inlined_call_operand.hbm [shape: bf16[16,128], index: 9, kind: output, shape index: {}]  }
   0x1   :  { %v1071_v0 = vld [vmem:[%s1459_s1 + $0x40] sm:$0xff]   ;;  %v1075_v4 = vld [vmem:[%s1459_s1 + $0x48] sm:$0xff]   ;;  %v1079_v8 = vld [vmem:[%s1459_s1 + $0x50] sm:$0xff]  }
   0x2   :  { %v1072_v1 = vld [vmem:[%s1459_s1] sm:$0xff]   ;;  %956 = vmatprep.subr.bf16.mxu0 %v1071_v0  ;;  %v1076_v5 = vld [vmem:[%s1459_s1 + $0x8] sm:$0xff]   ;;  %v1080_v9 = vld [vmem:[%s1459_s1 + $0x10] sm:$0xff]  }
   0x3   :  { %v1073_v2 = vld [vmem:[%s1459_s1 + $0xc0] sm:$0xff]   ;;  %957 = vmatpush3.bf16.msra.mxu0 %v1072_v1  ;;  %v1077_v6 = vld [vmem:[%s1459_s1 + $0xc8] sm:$0xff]   ;;  %v1081_v10 = vld [vmem:[%s1459_s1 + $0xd0] sm:$0xff]  }
   0x4   :  { %v1074_v3 = vld [vmem:[%s1459_s1 + $0x80] sm:$0xff]   ;;  %978 = vmatprep.subr.bf16.mxu1 %v1073_v2  ;;  %958 = vmatprep.subr.bf16.mxu0 %v1075_v4  ;;  %v1078_v7 = vld [vmem:[%s1459_s1 + $0x88] sm:$0xff]   ;;  %v1082_v11 = vld [vmem:[%s1459_s1 + $0x90] sm:$0xff]  }
   0x5   :  { %979 = vmatpush3.bf16.msra.mxu1 %v1074_v3  ;;  %v1083_v12 = vld [vmem:[%s1459_s1 + $0x58] sm:$0xff]   ;;  %v1087_v16 = vld [vmem:[%s1459_s1 + $0x60] sm:$0xff]   ;;  %v1091_v20 = vld [vmem:[%s1459_s1 + $0x68] sm:$0xff]  }
   0x6   :  { %980 = vmatprep.subr.bf16.mxu1 %v1077_v6  ;;  %v1084_v13 = vld [vmem:[%s1459_s1 + $0x18] sm:$0xff]   ;;  %v1088_v17 = vld [vmem:[%s1459_s1 + $0x20] sm:$0xff]   ;;  %v1092_v21 = vld [vmem:[%s1459_s1 + $0x28] sm:$0xff]  }
   0x7   :  { %959 = vmatpush3.bf16.msra.mxu0 %v1076_v5  ;;  %v1085_v14 = vld [vmem:[%s1459_s1 + $0xd8] sm:$0xff]   ;;  %v1089_v18 = vld [vmem:[%s1459_s1 + $0xe0] sm:$0xff]   ;;  %v1093_v22 = vld [vmem:[%s1459_s1 + $0xe8] sm:$0xff]  }
   0x8   :  { %960 = vmatprep.subr.bf16.mxu0 %v1079_v8  ;;  %v1086_v15 = vld [vmem:[%s1459_s1 + $0x98] sm:$0xff]   ;;  %v1090_v19 = vld [vmem:[%s1459_s1 + $0xa0] sm:$0xff]   ;;  %v1094_v23 = vld [vmem:[%s1459_s1 + $0xa8] sm:$0xff]  }
   0x9   :  { %981 = vmatpush3.bf16.msra.mxu1 %v1078_v7  ;;  %v1095_v24 = vld [vmem:[%s1459_s1 + $0x70] sm:$0xff]   ;;  %v1099_v28 = vld [vmem:[%s1459_s1 + $0x78] sm:$0xff]   ;;  %v35_v31 = vld [vmem:[%s1458_s0 + $0x8] sm:$0xff] }
   0xa   :  { %982 = vmatprep.subr.bf16.mxu1 %v1081_v10  ;;  %v1096_v25 = vld [vmem:[%s1459_s1 + $0x30] sm:$0xff]   ;;  %v1100_v29 = vld [vmem:[%s1459_s1 + $0x38] sm:$0xff]   ;;  %v42_v32 = vld [vmem:[%s1458_s0 + $0x40] sm:$0xff] }
   0xb   :  { %961 = vmatpush3.bf16.msra.mxu0 %v1080_v9  ;;  %v1097_v26 = vld [vmem:[%s1459_s1 + $0xf0] sm:$0xff]   ;;  %v1101_v30 = vld [vmem:[%s1459_s1 + $0xf8] sm:$0xff]   ;;  %v49_v33 = vpack.c.bf16 %v42_v32, %v35_v31  ;;  %v34_v35 = vld [vmem:[%s1458_s0] sm:$0xff] }
   0xc   :  { %962 = vmatprep.subr.bf16.mxu0 %v1083_v12  ;;  %v1098_v27 = vld [vmem:[%s1459_s1 + $0xb0] sm:$0xff]   ;;  %v1102_v34 = vld [vmem:[%s1459_s1 + $0xb8] sm:$0xff]   ;;  %v1103_v38 = vld [vmem:[%s1459_s1 + $0x140] sm:$0xff]  }
   0xd   :  { %983 = vmatpush3.bf16.msra.mxu1 %v1082_v11  ;;  %v41_v36 = vld [vmem:[%s1458_s0 + $0x38] sm:$0xff]  ;;  %490 = vmatprep.mubr.bf16.mxu0 %v49_v33  ;;  %v44_v40 = vld [vmem:[%s1458_s0 + $0x50] sm:$0xff]  ;;  %v1104_v42 = vld [vmem:[%s1459_s1 + $0x100] sm:$0xff]  }
   0xe   :  { %984 = vmatprep.subr.bf16.mxu1 %v1085_v14  ;;  %v48_v37 = vpack.c.bf16 %v41_v36, %v34_v35  ;;  %v37_v39 = vld [vmem:[%s1458_s0 + $0x18] sm:$0xff]  ;;  %v36_v44 = vld [vmem:[%s1458_s0 + $0x10] sm:$0xff]  ;;  %v43_v45 = vld [vmem:[%s1458_s0 + $0x48] sm:$0xff] }
   0xf   :  { %963 = vmatpush3.bf16.msra.mxu0 %v1084_v13  ;;  %v51_v41 = vpack.c.bf16 %v44_v40, %v37_v39  ;;  %v50_v46 = vpack.c.bf16 %v43_v45, %v36_v44  ;;  %v1105_v47 = vld [vmem:[%s1459_s1 + $0x148] sm:$0xff]   ;;  %v1107_v49 = vld [vmem:[%s1459_s1 + $0x150] sm:$0xff]   ;;  %v1109_v51 = vld [vmem:[%s1459_s1 + $0x158] sm:$0xff]  }
  0x10   :  { %964 = vmatprep.subr.bf16.mxu0 %v1087_v16  ;;  %v1106_v48 = vld [vmem:[%s1459_s1 + $0x108] sm:$0xff]   ;;  %v1108_v50 = vld [vmem:[%s1459_s1 + $0x110] sm:$0xff]   ;;  %v1110_v52 = vld [vmem:[%s1459_s1 + $0x118] sm:$0xff]  }
  0x11   :  { %985 = vmatpush3.bf16.msra.mxu1 %v1086_v15  ;;  %531 = vmatprep.mubr.bf16.mxu1 %v51_v41  ;;  %v1111_v53 = vld [vmem:[%s1459_s1 + $0x160] sm:$0xff]   ;;  %v1113_v55 = vld [vmem:[%s1459_s1 + $0x168] sm:$0xff]   ;;  %v1115_v59 = vld [vmem:[%s1459_s1 + $0x170] sm:$0xff]  }
  0x12   :  { %986 = vmatprep.subr.bf16.mxu1 %v1089_v18  ;;  %v1112_v54 = vld [vmem:[%s1459_s1 + $0x120] sm:$0xff]   ;;  %v39_v57 = vld [vmem:[%s1458_s0 + $0x28] sm:$0xff]  ;;  %v40_v62 = vld [vmem:[%s1458_s0 + $0x30] sm:$0xff] }
  0x13   :  { %965 = vmatpush3.bf16.msra.mxu0 %v1088_v17  ;;  %v1119_v56 = vld [vmem:[%s1459_s1 + $0x180] sm:$0xff]   ;;  %v1114_v58 = vld [vmem:[%s1459_s1 + $0x128] sm:$0xff]   ;;  %v1116_v1 = vld [vmem:[%s1459_s1 + $0x130] sm:$0xff]  }
  0x14   :  { %966 = vmatprep.subr.bf16.mxu0 %v1091_v20  ;;  %v46_v60 = vld [vmem:[%s1458_s0 + $0x60] sm:$0xff]  ;;  %v47_v63 = vld [vmem:[%s1458_s0 + $0x68] sm:$0xff]  ;;  %v1117_v2 = vld [vmem:[%s1459_s1 + $0x178] sm:$0xff]  }
  0x15   :  { %987 = vmatpush3.bf16.msra.mxu1 %v1090_v19  ;;  %v53_v61 = vpack.c.bf16 %v46_v60, %v39_v57  ;;  %v54_v0 = vpack.c.bf16 %v47_v63, %v40_v62 }
  0x16   :  { %988 = vmatprep.subr.bf16.mxu1 %v1093_v22 }
  0x17   :  { %967 = vmatpush3.bf16.msra.mxu0 %v1092_v21 }
  0x18   :  { %968 = vmatprep.subr.bf16.mxu0 %v1095_v24 }
  0x19   :  { %989 = vmatpush3.bf16.msra.mxu1 %v1094_v23 }
  0x1a   :  { %990 = vmatprep.subr.bf16.mxu1 %v1097_v26 }
  0x1b   :  { %969 = vmatpush3.bf16.msra.mxu0 %v1096_v25 }
  0x1c   :  { %970 = vmatprep.subr.bf16.mxu0 %v1099_v28 }
  0x1d   :  { %991 = vmatpush3.bf16.msra.mxu1 %v1098_v27 }
  0x1e   :  { %992 = vmatprep.subr.bf16.mxu1 %v1101_v30 }
  0x1f   :  { %971 = vmatpush3.bf16.msra.mxu0 %v1100_v29 }
  0x20   :  { %1000 = vmatprep.subr.bf16.mxu0 %v1103_v38 }
  0x21   :  { %993 = vmatpush3.bf16.msra.mxu1 %v1102_v34 }
  0x22   :  { %1034 = vmatprep.subr.bf16.mxu1 %v1151_v43  ;;  %491 = vmatmul.mubr.bf16.vlgmr.msra.gmra.mrb[0].mxu0 %v48_v37 }
  0x23   :  { %1001 = vmatpush3.bf16.msra.mxu0 %v1104_v42  ;;  %572 = vmatprep.mubr.bf16.mxu0 %v53_v61 }
  0x24   :  { %532 = vmatmul.mubr.bf16.vlgmr.msra.gmra.mrb[0].mxu1 %v50_v46  ;;  %1002 = vmatprep.subr.bf16.mxu0 %v1105_v47 }
  0x25   :  { %1036 = vmatprep.mubr.msk.bf16.mxu1 %vm1152_vm0, %v1151_v43  ;;  %1035 = vmatpush3.bf16.msra.mxu1 %v1119_v56 }
  0x26   :  { %1040 = vmatprep.subr.bf16.mxu1 %v1151_v43 }
  0x27   :  { %1003 = vmatpush3.bf16.msra.mxu0 %v1106_v48 }
  0x28   :  { %1004 = vmatprep.subr.bf16.mxu0 %v1107_v49 }
  0x2b   :  { %1005 = vmatpush3.bf16.msra.mxu0 %v1108_v50 }
  0x2c   :  { %1006 = vmatprep.subr.bf16.mxu0 %v1109_v51  ;;  %1037 = vmatmul.mubr.msk.bf16.vlgmr.msra.gmra.mrb[4].mxu1 %vm454_vm1, %v54_v0 }
  0x2d   :  { %1048 = vmatprep.mubr.msk.bf16.mxu1 %vm1152_vm0, %v1151_v43 }
  0x2f   :  { %1007 = vmatpush3.bf16.msra.mxu0 %v1110_v52 }
  0x30   :  { %1008 = vmatprep.subr.bf16.mxu0 %v1111_v53 }
  0x33   :  { %1009 = vmatpush3.bf16.msra.mxu0 %v1112_v54 }
  0x34   :  { %1010 = vmatprep.subr.bf16.mxu0 %v1113_v55 }
  0x37   :  { %1011 = vmatpush3.bf16.msra.mxu0 %v1114_v58 }
  0x38   :  { %1012 = vmatprep.subr.bf16.mxu0 %v1115_v59 }
  0x39   :  { %14 = vsyncpa [#allocation3], 0  ;;  %v1118_v3 = vld [vmem:[%s1459_s1 + $0x138] sm:$0xff]   ;;  %v38_v4 = vld [vmem:[%s1458_s0 + $0x20] sm:$0xff]  ;;  %vm671_vm2 = vcmask 1045504   ;;  %vm667_vm5 = vcmask 490496  }
  0x3a   :  { %v45_v5 = vld [vmem:[%s1458_s0 + $0x58] sm:$0xff]  ;;  %v1120_v7 = vld [vmem:[%s1461_s3] sm:$0xff]   ;;  %v1121_v8 = vld [vmem:[%s1461_s3 + $0x8] sm:$0xff]   ;;  %vm746_vm8 = vcmask 261120  }
  0x3b   :  { %1013 = vmatpush3.bf16.msra.mxu0 %v1116_v1  ;;  %v52_v6 = vpack.c.bf16 %v45_v5, %v38_v4  ;;  %1041 = vmatpush3.bf16.msra.mxu1 %v1120_v7  ;;  %v1122_v9 = vld [vmem:[%s1461_s3 + $0x10] sm:$0xff]   ;;  %v1123_v10 = vld [vmem:[%s1461_s3 + $0x18] sm:$0x3f]   ;;  %v883_v13 = vld [vmem:[%s1460_s2] ss:$0 sm:$0xff] }
  0x3c   :  { %1014 = vmatprep.subr.bf16.mxu0 %v1117_v2  ;;  %1042 = vmatprep.subr.bf16.mxu1 %v1151_v43  ;;  %v673_v11 = vsel %vm671_vm2, %v1123_v10, 0  ;;  %v1124_v49 = vld [vmem:[%s1463_s5] sm:$0xff]   ;;  %v1125_v50 = vld [vmem:[%s1463_s5 + $0x8] sm:$0xff]  }
  0x3d   :  { %v934_v51 = vld [vmem:[%s1462_s4] ss:$0 sm:$0xff] }
  0x3e   :  { %v1126_v62 = vld [vmem:[%s1465_s7] sm:$0xff]  }
  0x3f   :  { %1015 = vmatpush3.bf16.msra.mxu0 %v1118_v3  ;;  %1043 = vmatpush3.bf16.msra.mxu1 %v1121_v8  ;;  %v940_v63 = vld [vmem:[%s1464_s6] ss:$0 sm:$0xff]  ;;  %s1153_s6 = smov [#allocation2]  }
  0x40   :  { %1060 = vmatprep.subr.bf16.mxu0 %v1151_v43  ;;  %1044 = vmatprep.subr.bf16.mxu1 %v1151_v43  ;;  %s872_s24 = sshll.u32 %s1153_s6, 4  ;;  %s873_s24 = int_to_ptr.vmem [resolvable:$true] %s872_s24 }
  0x41   :  { %s1127_s25 = scalar_lea.vmem %s873_s24, 128  ;;  %p1132_p1 = scmp.lt.s32.totalorder %s873_s24, %s873_s24 }
  0x42   :  { %573 = vmatmul.mubr.bf16.vlgmr.msra.gmra.mrb[4].mxu0 %v52_v6  ;;  %p1128_p0 = scmp.ne.s32.totalorder %s873_s24, %s1127_s25  ;;  %p1133_p2 = scmp.lt.s32.totalorder %s1127_s25, %s1127_s25 }
  0x43   :  { %1062 = vmatprep.mubr.msk.bf16.mxu0 %vm1152_vm0, %v1151_v43  ;;  %1045 = vmatpush3.bf16.msra.mxu1 %v1122_v9 }
  0x44   :  { %1046 = vmatprep.subr.bf16.mxu1 %v1151_v43  ;;  %1061 = vmatpush3.bf16.msra.mxu0 %v1126_v62  ;;  %p1134_p3 = por %p1133_p2, %p1132_p1 }
  0x46   :  { %p1135_p4 = pnand %p1134_p3, %p1128_p0 }
  0x47   :  { %1047 = vmatpush3.bf16.msra.mxu1 %v673_v11  ;;  %v944_v11 = vld [vmem:[%s1466_s8] ss:$0 sm:$0xff] }
  0x48   :  { %1052 = vmatprep.subr.bf16.mxu1 %v1151_v43 }
  0xf5   :  { %v972_v12 = vpop.f32.mrb[0].mxu0 }
  0xf6   :  { %v973_v14 = vpop.f32.mrb[1].mxu0 }
  0xf7   :  { %v974_v15 = vadd.f32 %v973_v14, %v972_v12  ;;  %v975_v16 = vpop.f32.mrb[2].mxu0  ;;  %v994_v17 = vpop.f32.mrb[0].mxu1 }
  0xf8   :  { %v976_v18 = vpop.f32.mrb[3].mxu0  ;;  %v995_v21 = vpop.f32.mrb[1].mxu1 }
  0xf9   :  { %v493_v19 = vadd.f32 %v974_v15, %v883_v13  ;;  %v977_v20 = vadd.f32 %v976_v18, %v975_v16  ;;  %v996_v22 = vadd.f32 %v995_v21, %v994_v17  ;;  %v997_v23 = vpop.f32.mrb[2].mxu1 }
  0xfa   :  { %v998_v25 = vpop.f32.mrb[3].mxu1 }
  0xfb   :  { %v496_v24 = vadd.f32 %v977_v20, %v883_v13  ;;  %v534_v26 = vadd.f32 %v996_v22, %v493_v19  ;;  %v999_v27 = vadd.f32 %v998_v25, %v997_v23 }
  0xfd   :  { %v537_v28 = vadd.f32 %v999_v27, %v496_v24 }
  0xff   :  { %v615_v29 = vpop.f32.mrb[4].mxu1 }
 0x100   :  { %v1038_v30 = vpop.f32.mrb[5].mxu1 }
 0x101   :  { %v618_v31 = vpop.f32.mrb[6].mxu1 }
 0x102   :  { %v1039_v32 = vpop.f32.mrb[7].mxu1 }
 0x115   :  { %v1016_v33 = vpop.f32.mrb[4].mxu0 }
 0x116   :  { %v1017_v34 = vpop.f32.mrb[5].mxu0 }
 0x117   :  { %v1018_v35 = vadd.f32 %v1017_v34, %v1016_v33  ;;  %v1019_v36 = vpop.f32.mrb[6].mxu0 }
 0x118   :  { %v1020_v37 = vpop.f32.mrb[7].mxu0 }
 0x119   :  { %v575_v38 = vadd.f32 %v1018_v35, %v534_v26  ;;  %v1021_v39 = vadd.f32 %v1020_v37, %v1019_v36 }
 0x11b   :  { %v616_v40 = vadd.f32 %v615_v29, %v575_v38  ;;  %v578_v41 = vadd.f32 %v1021_v39, %v537_v28 }
 0x11d   :  { %v624_v42 = vmul.f32 0.01, %v616_v40  ;;  %v619_v44 = vadd.f32 %v618_v31, %v578_v41  ;;  %vm622_vm3 = vcmp.gt.f32.partialorder %v616_v40, 0.0 }
 0x11f   :  { %vm623_vm4 = vcmp.gt.f32.partialorder %v619_v44, 0.0  ;;  %v625_v45 = vmul.f32 0.01, %v619_v44  ;;  %v626_v46 = vsel %vm622_vm3, %v616_v40, %v624_v42 }
 0x121   :  { %v627_v47 = vsel %vm623_vm4, %v619_v44, %v625_v45 }
 0x122   :  { %v628_v48 = vpack.c.bf16 %v627_v47, %v626_v46 }
 0x124   :  { %1049 = vmatmul.mubr.msk.bf16.vlgmr.msra.gmra.mrb[8].mxu1 %vm667_vm5, %v628_v48 }
 0x125   :  { %1056 = vmatprep.mubr.msk.bf16.mxu1 %vm1152_vm0, %v1151_v43  ;;  %1053 = vmatpush3.bf16.msra.mxu1 %v1124_v49 }
 0x126   :  { %1054 = vmatprep.subr.bf16.mxu1 %v1151_v43 }
 0x129   :  { %1055 = vmatpush3.bf16.msra.mxu1 %v1125_v50 }
 0x1f7   :  { %v709_v52 = vpop.f32.mrb[8].mxu1 }
 0x1f8   :  { %v710_v53 = vadd.f32 %v934_v51, %v709_v52  ;;  %v1050_v54 = vpop.f32.mrb[9].mxu1 }
 0x1f9   :  { %v712_v55 = vpop.f32.mrb[10].mxu1 }
 0x1fa   :  { %v718_v56 = vmul.f32 0.01, %v710_v53  ;;  %v713_v57 = vadd.f32 %v934_v51, %v712_v55  ;;  %v1051_v58 = vpop.f32.mrb[11].mxu1  ;;  %vm716_vm6 = vcmp.gt.f32.partialorder %v710_v53, 0.0 }
 0x1fc   :  { %vm717_vm7 = vcmp.gt.f32.partialorder %v713_v57, 0.0  ;;  %v719_v59 = vmul.f32 0.01, %v713_v57  ;;  %v720_v43 = vsel %vm716_vm6, %v710_v53, %v718_v56 }
 0x1fe   :  { %v721_v60 = vsel %vm717_vm7, %v713_v57, %v719_v59 }
 0x1ff   :  { %v722_v61 = vpack.c.bf16 %v721_v60, %v720_v43 }
 0x201   :  { %1057 = vmatmul.mubr.msk.bf16.vlgmr.msra.gmra.mrb[12].mxu1 %vm746_vm8, %v722_v61 }
 0x2d4   :  { %v784_v0 = vpop.f32.mrb[12].mxu1 }
 0x2d5   :  { %v785_v1 = vadd.f32 %v940_v63, %v784_v0  ;;  %v1058_v2 = vpop.f32.mrb[13].mxu1 }
 0x2d6   :  { %v787_v3 = vpop.f32.mrb[14].mxu1 }
 0x2d7   :  { %v793_v4 = vmul.f32 0.01, %v785_v1  ;;  %v788_v5 = vadd.f32 %v940_v63, %v787_v3  ;;  %v1059_v6 = vpop.f32.mrb[15].mxu1  ;;  %vm791_vm9 = vcmp.gt.f32.partialorder %v785_v1, 0.0 }
 0x2d9   :  { %vm792_vm10 = vcmp.gt.f32.partialorder %v788_v5, 0.0  ;;  %v794_v7 = vmul.f32 0.01, %v788_v5  ;;  %v795_v8 = vsel %vm791_vm9, %v785_v1, %v793_v4 }
 0x2db   :  { %v796_v9 = vsel %vm792_vm10, %v788_v5, %v794_v7 }
 0x2dc   :  { %v797_v10 = vpack.c.bf16 %v796_v9, %v795_v8 }
 0x2de   :  { %1063 = vmatmul.mubr.msk.bf16.vlgmr.msra.gmra.mrb[8].mxu0 %vm454_vm1, %v797_v10 }
 0x3b1   :  { %v850_v12 = vpop.f32.mrb[8].mxu0 }
 0x3b2   :  { %v1064_v13 = vpop.f32.mrb[9].mxu0  ;;  %v851_v15 = vadd.f32 %v944_v11, %v850_v12 }
 0x3b3   :  { %v853_v14 = vpop.f32.mrb[10].mxu0 }
 0x3b4   :  { %v854_v16 = vadd.f32 %v944_v11, %v853_v14  ;;  %v1065_v17 = vpop.f32.mrb[11].mxu0 }
 0x3b6   :  { %v954_v18 = vpack.c.bf16 %v854_v16, %v851_v15 }
 0x3b8   :  { %955 = vst [vmem:[#allocation2] sm:$0xff] %v954_v18  }
 0x3b9   :  { %1138 = shalt.err (!%p1135_p4)
}
 0x3ba   :  { %s1139_s27 = scalar_lea.hbm %s1467_s9, 128 }
 0x3bb   :  { %p1140_p5 = scmp.ne.s32.totalorder %s1467_s9, %s1139_s27  ;;  %p1143_p6 = scmp.lt.u32.totalorder %s1139_s27, %s1467_s9 }
 0x3bd   :  { %p1145_p7 = pnand %p1143_p6, %p1140_p5 }
 0x3bf   :  { %1148 = shalt.err (!%p1145_p7)
}
 0x3c0   :  { %s1154_s1 = smov 64   ;;  %s1155_s11 = smov 4  }
 0x3c1   :  { %878 = dma.vmem_to_hbm [thread:$0]  %s873_s24, 128, %s1467_s9, [#allocation3], %s1154_s1, %s1154_s1, %s1155_s11  }
 0x3c2   :  { %1149 = dma.done.wait [#allocation3], 128  }
 0x3c3   :  { %1150 = vsyncadd [#allocation3], 4294967168 }
 0x3c4   :  { %882 = vsyncpa [#allocation3], 1 }

</bundles_post_ra>
